<compile_context>
chip_gen: v7x
topology: tpu7x:2x2x1
jax: 0.10.0
libtpu: 0.0.40
codegen_flags: <defaults>
</compile_context>

<pallas_src>
import functools
import math

import jax
import jax.numpy as jnp
from jax.experimental import pallas as pl
from jax.experimental.pallas import tpu as pltpu

MXU_DTYPE = jnp.bfloat16  # MXU operand dtype (v6e/v7x); accumulation stays f32.


def _pick_tile(dim, candidates):
    """Largest candidate tile that exactly divides `dim`, else the full dim."""
    for c in candidates:
        if c <= dim and dim % c == 0:
            return c
    return dim


# ----------------------------- tiled linear --------------------------------

def _linear_kernel(x_ref, w_ref, b_ref, o_ref, acc_ref, *, act):
    @pl.when(pl.program_id(2) == 0)
    def _():
        acc_ref[...] = jnp.zeros_like(acc_ref)

    acc_ref[...] += jnp.dot(x_ref[...].astype(MXU_DTYPE),
                            w_ref[...].astype(MXU_DTYPE),
                            preferred_element_type=jnp.float32)

    @pl.when(pl.program_id(2) == pl.num_programs(2) - 1)
    def _():
        y = acc_ref[...] + b_ref[...].astype(jnp.float32)
        if act == "gelu":
            # TODO(synk): PyTorch nn.GELU defaults to the exact erf form; the tanh
            # approximation is used (erf has no guaranteed Mosaic lowering), ~1e-3 diff.
            y = jax.nn.gelu(y, approximate=True)
        o_ref[...] = y.astype(o_ref.dtype)


def pallas_linear(x, w, b, act=None):
    """y = act(x @ w + b).  x:(M,K)  w:(K,N)  b:(N,).  Tiled M/N/K, f32 accumulator."""
    M, K = x.shape
    N = w.shape[1]
    tm = _pick_tile(M, (256, 128, 64, 32, 16, 8))
    tn = _pick_tile(N, (512, 256, 128))
    tk = _pick_tile(K, (512, 256, 128))
    kernel = functools.partial(_linear_kernel, act=act)
    return pl.pallas_call(
        kernel,
        out_shape=jax.ShapeDtypeStruct((M, N), x.dtype),
        grid=(M // tm, N // tn, K // tk),
        in_specs=[
            pl.BlockSpec((tm, tk), lambda i, j, k: (i, k)),
            pl.BlockSpec((tk, tn), lambda i, j, k: (k, j)),
            pl.BlockSpec((1, tn), lambda i, j, k: (0, j)),
        ],
        out_specs=pl.BlockSpec((tm, tn), lambda i, j, k: (i, j)),
        scratch_shapes=[pltpu.VMEM((tm, tn), jnp.float32)],
        compiler_params=pltpu.CompilerParams(
            dimension_semantics=("parallel", "parallel", "arbitrary")),
    )(x, w, b.reshape(1, N))


# --------------- fused SSM causal conv + D*u skip + GELU --------------------

def _s4_conv_kernel(u_ref, t_ref, d_ref, o_ref):
    u = u_ref[0].astype(jnp.float32)                    # (L, th)
    t = t_ref[...].astype(jnp.float32)                  # (L, L, th); t[l,j,h] = K[h, l-j]
    y = jnp.sum(t * u[None, :, :], axis=1)              # causal conv over time, per channel
    y = y + d_ref[...].astype(jnp.float32) * u          # skip term D * u
    y = jax.nn.gelu(y, approximate=True)
    o_ref[0] = y.astype(o_ref.dtype)


def pallas_s4_conv(u, toeplitz, d_skip):
    """y = GELU(causal_conv(u, K) + D*u).  u:(B,L,H)  toeplitz:(L,L,H)  d_skip:(H,)."""
    B, L, H = u.shape
    th = _pick_tile(H, (512, 256, 128))
    return pl.pallas_call(
        _s4_conv_kernel,
        out_shape=jax.ShapeDtypeStruct((B, L, H), u.dtype),
        grid=(B, H // th),
        in_specs=[
            pl.BlockSpec((1, L, th), lambda b, h: (b, 0, h)),
            pl.BlockSpec((L, L, th), lambda b, h: (0, 0, h)),
            pl.BlockSpec((1, th), lambda b, h: (0, h)),
        ],
        out_specs=pl.BlockSpec((1, L, th), lambda b, h: (b, 0, h)),
        compiler_params=pltpu.CompilerParams(
            dimension_semantics=("parallel", "parallel")),
    )(u, toeplitz, d_skip.reshape(1, H))


# ------------- fused output projection + GLU + residual + LayerNorm ---------

def _glu_res_ln_kernel(y_ref, w_ref, b_ref, r_ref, g_ref, bt_ref, o_ref, acc_ref,
                       *, hidden, eps):
    @pl.when(pl.program_id(1) == 0)
    def _():
        acc_ref[...] = jnp.zeros_like(acc_ref)

    acc_ref[...] += jnp.dot(y_ref[...].astype(MXU_DTYPE),
                            w_ref[...].astype(MXU_DTYPE),
                            preferred_element_type=jnp.float32)

    @pl.when(pl.program_id(1) == pl.num_programs(1) - 1)
    def _():
        z = acc_ref[...] + b_ref[...].astype(jnp.float32)        # (tm, 2H), VMEM-resident
        glu = z[:, :hidden] * jax.nn.sigmoid(z[:, hidden:])      # (tm, H)
        res = glu + r_ref[...].astype(jnp.float32)               # residual
        mu = jnp.mean(res, axis=-1, keepdims=True)
        var = jnp.mean(jnp.square(res - mu), axis=-1, keepdims=True)
        out = (res - mu) * jax.lax.rsqrt(var + eps)
        out = out * g_ref[...].astype(jnp.float32) + bt_ref[...].astype(jnp.float32)
        o_ref[...] = out.astype(o_ref.dtype)


def pallas_glu_residual_ln(y, w, b, resid, gamma, beta, eps=1e-5):
    """out = LayerNorm(GLU(y @ w + b) + resid).  y,resid:(M,H)  w:(H,2H).
    The (M, 2H) hidden activation never leaves VMEM (FFN-style fusion)."""
    M, H = y.shape
    N2 = w.shape[1]  # 2H kept un-tiled; fits VMEM for realistic d_model (<= few K).
    tm = _pick_tile(M, (256, 128, 64, 32, 16, 8))
    tk = _pick_tile(H, (512, 256, 128))
    kernel = functools.partial(_glu_res_ln_kernel, hidden=H, eps=eps)
    return pl.pallas_call(
        kernel,
        out_shape=jax.ShapeDtypeStruct((M, H), y.dtype),
        grid=(M // tm, H // tk),
        in_specs=[
            pl.BlockSpec((tm, tk), lambda i, k: (i, k)),
            pl.BlockSpec((tk, N2), lambda i, k: (k, 0)),
            pl.BlockSpec((1, N2), lambda i, k: (0, 0)),
            pl.BlockSpec((tm, H), lambda i, k: (i, 0)),
            pl.BlockSpec((1, H), lambda i, k: (0, 0)),
            pl.BlockSpec((1, H), lambda i, k: (0, 0)),
        ],
        out_specs=pl.BlockSpec((tm, H), lambda i, k: (i, 0)),
        scratch_shapes=[pltpu.VMEM((tm, N2), jnp.float32)],
        compiler_params=pltpu.CompilerParams(
            dimension_semantics=("parallel", "arbitrary")),
    )(y, w, b.reshape(1, N2), resid, gamma.reshape(1, H), beta.reshape(1, H))


# -------------------- S4D kernel / Toeplitz (parameter-only glue) -----------

def s4d_ssm_kernel(lp, L):
    """S4D convolution kernel K (H, L) from parameters only (plain-JAX complex math)."""
    dt = jnp.exp(lp["log_dt"])[:, None]                          # (H, 1)
    A = -jnp.exp(lp["log_A_real"]) + 1j * lp["A_imag"]           # (H, N)
    C = lp["C_re"] + 1j * lp["C_im"]                             # (H, N)
    dtA = A * dt
    Ct = C * (jnp.exp(dtA) - 1.0) / A
    powers = jnp.exp(dtA[:, :, None] * jnp.arange(L))            # (H, N, L)
    return (2.0 * jnp.real(jnp.einsum("hn,hnl->hl", Ct, powers))).astype(jnp.float32)


def causal_toeplitz(K):
    """T[l, j, h] = K[h, l-j] for l >= j else 0.   K:(H,L) -> (L,L,H)."""
    H, L = K.shape
    idx = jnp.arange(L)[:, None] - jnp.arange(L)[None, :]        # (L, L)
    gathered = K.T[jnp.clip(idx, 0, L - 1)]                      # (L, L, H)
    return jnp.where((idx >= 0)[:, :, None], gathered, 0.0)
    # TODO(synk): the reference S4 layer does this convolution with torch.fft
    # (rfft/irfft); there is no Pallas/Mosaic FFT, so a direct Toeplitz conv is
    # used — exact for short sequences, O(L^2) for very long ones.


# ------------------------------- model glue --------------------------------

def s4d_block(x, lp):
    """One S4Model block: x -> LayerNorm(x + S4D(x)).   x: (B, L, H)."""
    B, L, H = x.shape
    K = s4d_ssm_kernel(lp, L)
    T = causal_toeplitz(K)
    y = pallas_s4_conv(x, T, lp["D"])                       # conv + D*u + GELU
    x = pallas_glu_residual_ln(
        y.reshape(B * L, H), lp["w_out"], lp["b_out"],
        x.reshape(B * L, H), lp["ln_g"], lp["ln_b"]).reshape(B, L, H)
    return x


def s4_model_forward(tokens, params, *, pooling="avg", problem="classification"):
    """Mirrors S4_Model.forward for the classification ('else') branch."""
    # TODO(synk): the 'adding' branch (x = self.linear(x) on (B, n_vec, 2) inputs,
    # no final projection) is not exercised here; it would reuse pallas_linear.
    B, S = tokens.shape
    x = params["emb"][tokens]                                # embedding gather (glue)
    x = x + params["posenc"][jnp.arange(S)][None, :, :]      # positional embedding (glue)
    D = x.shape[-1]
    # S4Model: encoder linear, then depth x [S4D -> residual -> post-LayerNorm]
    x = pallas_linear(x.reshape(B * S, D), params["w_enc"], params["b_enc"]).reshape(B, S, D)
    for lp in params["layers"]:
        x = s4d_block(x, lp)
    if pooling == "avg":
        pooled = jnp.mean(x, axis=1)                         # (B, D) (glue reduction)
    elif pooling == "cls":
        pooled = x[:, 0, :]
    else:  # 'flatten'
        pooled = x.reshape(B, -1)
    logits = pallas_linear(pooled, params["w_final"], params["b_final"])
    return logits


# ------------------------------- param init --------------------------------

def _init_linear(key, fan_in, fan_out):
    kw, kb = jax.random.split(key)
    bound = 1.0 / math.sqrt(fan_in)
    w = jax.random.uniform(kw, (fan_in, fan_out), jnp.float32, -bound, bound)
    b = jax.random.uniform(kb, (fan_out,), jnp.float32, -bound, bound)
    return w, b


def init_params(key, *, vocab_size, dim, depth, n_vec, n_class, d_state=64,
                pooling="avg", dt_min=1e-3, dt_max=1e-1):
    H, N = dim, d_state // 2
    keys = jax.random.split(key, 5 + depth)
    params = {}
    params["emb"] = jax.random.normal(keys[0], (vocab_size, dim), jnp.float32)
    params["posenc"] = jax.random.normal(keys[1], (n_vec, dim), jnp.float32)
    params["w_enc"], params["b_enc"] = _init_linear(keys[2], dim, dim)
    final_in = dim * n_vec if pooling == "flatten" else dim
    params["w_final"], params["b_final"] = _init_linear(keys[3], final_in, n_class)
    layers = []
    for d in range(depth):
        lk = jax.random.split(keys[5 + d], 6)
        log_dt = (jax.random.uniform(lk[0], (H,), jnp.float32) *
                  (math.log(dt_max) - math.log(dt_min)) + math.log(dt_min))
        w_out, b_out = _init_linear(lk[4], H, 2 * H)
        layers.append(dict(
            log_dt=log_dt,
            log_A_real=jnp.log(0.5 * jnp.ones((H, N), jnp.float32)),
            A_imag=math.pi * jnp.broadcast_to(jnp.arange(N, dtype=jnp.float32), (H, N)),
            C_re=jax.random.normal(lk[1], (H, N), jnp.float32) * (0.5 ** 0.5),
            C_im=jax.random.normal(lk[2], (H, N), jnp.float32) * (0.5 ** 0.5),
            D=jax.random.normal(lk[3], (H,), jnp.float32),
            w_out=w_out, b_out=b_out,
            ln_g=jnp.ones((H,), jnp.float32), ln_b=jnp.zeros((H,), jnp.float32),
        ))
    params["layers"] = layers
    return params


# ---------------------------------- main ------------------------------------

if __name__ == "__main__":
    vocab_size, dim, depth = 16, 32, 2
    n_vec, n_class, batch = 8, 4, 2

    key = jax.random.PRNGKey(0)
    k_tok, k_par = jax.random.split(key)
    tokens = jax.random.randint(k_tok, (batch, n_vec), 0, vocab_size, dtype=jnp.int32)
    params = init_params(k_par, vocab_size=vocab_size, dim=dim, depth=depth,
                         n_vec=n_vec, n_class=n_class, pooling="avg")

    fwd = jax.jit(functools.partial(
        s4_model_forward, pooling="avg", problem="classification"))
    logits = fwd(tokens, params)
    jax.block_until_ready(logits)
    assert logits.shape == (batch, n_class)
    print("KERNEL_OK")
</pallas_src>

<mosaic_0001>
module attributes {stable_mosaic.version = 11 : i64} {
  func.func @_s4_conv_kernel(%arg0: i32, %arg1: i32, %arg2: memref<1x8x32xf32, #tpu.memory_space<vmem>>, %arg3: memref<8x8x32xf32, #tpu.memory_space<vmem>>, %arg4: memref<1x32xf32, #tpu.memory_space<vmem>>, %arg5: memref<1x8x32xf32, #tpu.memory_space<vmem>>) attributes {dimension_semantics = [#tpu.dimension_semantics<parallel>, #tpu.dimension_semantics<parallel>], iteration_bounds = array<i64: 2, 1>, scalar_prefetch = 0 : i64, scratch_operands = 0 : i64, tpu.core_type = #tpu.core_type<tc>, window_params = [{transform_indices = @transform_0, window_bounds = array<i64: 1, 8, 32>}, {transform_indices = @transform_1, window_bounds = array<i64: 8, 8, 32>}, {transform_indices = @transform_2, window_bounds = array<i64: 1, 32>}, {transform_indices = @transform_3, window_bounds = array<i64: 1, 8, 32>}]} {
    %c0 = arith.constant 0 : index
    %c0_0 = arith.constant 0 : index
    %c0_1 = arith.constant 0 : index
    %0 = vector.load %arg2[%c0, %c0_0, %c0_1] : memref<1x8x32xf32, #tpu.memory_space<vmem>>, vector<1x8x32xf32>
    %1 = vector.shape_cast %0 : vector<1x8x32xf32> to vector<8x32xf32>
    %c0_2 = arith.constant 0 : index
    %c0_3 = arith.constant 0 : index
    %c0_4 = arith.constant 0 : index
    %2 = vector.load %arg3[%c0_2, %c0_3, %c0_4] : memref<8x8x32xf32, #tpu.memory_space<vmem>>, vector<8x8x32xf32>
    %3 = vector.shape_cast %1 : vector<8x32xf32> to vector<1x8x32xf32>
    %4 = vector.broadcast %3 : vector<1x8x32xf32> to vector<8x8x32xf32>
    %5 = arith.mulf %2, %4 : vector<8x8x32xf32>
    %cst = arith.constant dense<0.000000e+00> : vector<8x32xf32>
    %6 = vector.multi_reduction <add>, %5, %cst [1] : vector<8x8x32xf32> to vector<8x32xf32>
    %c0_5 = arith.constant 0 : index
    %c0_6 = arith.constant 0 : index
    %7 = vector.load %arg4[%c0_5, %c0_6] : memref<1x32xf32, #tpu.memory_space<vmem>>, vector<1x32xf32>
    %8 = vector.broadcast %7 : vector<1x32xf32> to vector<8x32xf32>
    %9 = arith.mulf %8, %1 : vector<8x32xf32>
    %10 = arith.addf %6, %9 : vector<8x32xf32>
    %11 = arith.mulf %10, %10 : vector<8x32xf32>
    %12 = arith.mulf %10, %11 : vector<8x32xf32>
    %cst_7 = arith.constant 4.471500e-02 : f32
    %13 = vector.broadcast %cst_7 : f32 to vector<8x32xf32>
    %14 = arith.mulf %13, %12 : vector<8x32xf32>
    %15 = arith.addf %10, %14 : vector<8x32xf32>
    %cst_8 = arith.constant 0.797884583 : f32
    %16 = vector.broadcast %cst_8 : f32 to vector<8x32xf32>
    %17 = arith.mulf %16, %15 : vector<8x32xf32>
    %18 = math.tanh %17 : vector<8x32xf32>
    %cst_9 = arith.constant 1.000000e+00 : f32
    %19 = vector.broadcast %cst_9 : f32 to vector<8x32xf32>
    %20 = arith.addf %19, %18 : vector<8x32xf32>
    %cst_10 = arith.constant 5.000000e-01 : f32
    %21 = vector.broadcast %cst_10 : f32 to vector<8x32xf32>
    %22 = arith.mulf %21, %20 : vector<8x32xf32>
    %23 = arith.mulf %10, %22 : vector<8x32xf32>
    %c0_11 = arith.constant 0 : index
    %c0_12 = arith.constant 0 : index
    %c0_13 = arith.constant 0 : index
    %24 = vector.load %arg5[%c0_11, %c0_12, %c0_13] : memref<1x8x32xf32, #tpu.memory_space<vmem>>, vector<1x8x32xf32>
    %25 = vector.shape_cast %24 : vector<1x8x32xf32> to vector<8x32xf32>
    %26 = vector.shape_cast %23 : vector<8x32xf32> to vector<1x8x32xf32>
    tpu.vector_store %arg5[%c0_11, %c0_12, %c0_13], %26 {strides = array<i32>} : memref<1x8x32xf32, #tpu.memory_space<vmem>>, vector<1x8x32xf32>,
    return
  }
  func.func @transform_0(%arg0: i32, %arg1: i32) -> (i32, i32, i32) {
    %c0_i32 = arith.constant 0 : i32
    %c0_i32_0 = arith.constant 0 : i32
    return %arg0, %c0_i32, %arg1 : i32, i32, i32
  }
  func.func @transform_1(%arg0: i32, %arg1: i32) -> (i32, i32, i32) {
    %c0_i32 = arith.constant 0 : i32
    %c0_i32_0 = arith.constant 0 : i32
    %c0_i32_1 = arith.constant 0 : i32
    return %c0_i32, %c0_i32_0, %arg1 : i32, i32, i32
  }
  func.func @transform_2(%arg0: i32, %arg1: i32) -> (i32, i32) {
    %c0_i32 = arith.constant 0 : i32
    %c0_i32_0 = arith.constant 0 : i32
    return %c0_i32, %arg1 : i32, i32
  }
  func.func @transform_3(%arg0: i32, %arg1: i32) -> (i32, i32, i32) {
    %c0_i32 = arith.constant 0 : i32
    %c0_i32_0 = arith.constant 0 : i32
    return %arg0, %c0_i32, %arg1 : i32, i32, i32
  }
}

module attributes {stable_mosaic.version = 11 : i64} {
  func.func @_linear_kernel(%arg0: i32, %arg1: i32, %arg2: i32, %arg3: memref<16x32xf32, #tpu.memory_space<vmem>>, %arg4: memref<32x32xf32, #tpu.memory_space<vmem>>, %arg5: memref<1x32xf32, #tpu.memory_space<vmem>>, %arg6: memref<16x32xf32, #tpu.memory_space<vmem>>, %arg7: memref<16x32xf32, #tpu.memory_space<vmem>>) attributes {dimension_semantics = [#tpu.dimension_semantics<parallel>, #tpu.dimension_semantics<parallel>, #tpu.dimension_semantics<arbitrary>], iteration_bounds = array<i64: 1, 1, 1>, scalar_prefetch = 0 : i64, scratch_operands = 1 : i64, tpu.core_type = #tpu.core_type<tc>, window_params = [{transform_indices = @transform_0, window_bounds = array<i64: 16, 32>}, {transform_indices = @transform_1, window_bounds = array<i64: 32, 32>}, {transform_indices = @transform_2, window_bounds = array<i64: 1, 32>}, {transform_indices = @transform_3, window_bounds = array<i64: 16, 32>}]} {
    %c0_i32 = arith.constant 0 : i32
    %0 = arith.cmpi eq, %arg2, %c0_i32 : i32
    %1 = arith.extui %0 : i1 to i32
    %c0_i32_0 = arith.constant 0 : i32
    %2 = arith.cmpi ne, %1, %c0_i32_0 : i32
    scf.if %2 {
      %cst_10 = arith.constant 0.000000e+00 : f32
      %14 = vector.broadcast %cst_10 : f32 to vector<16x32xf32>
      %c0_11 = arith.constant 0 : index
      %c0_12 = arith.constant 0 : index
      %15 = vector.load %arg7[%c0_11, %c0_12] : memref<16x32xf32, #tpu.memory_space<vmem>>, vector<16x32xf32>
      tpu.vector_store %arg7[%c0_11, %c0_12], %14 {strides = array<i32>} : memref<16x32xf32, #tpu.memory_space<vmem>>, vector<16x32xf32>,
    } else {
    }
    %c0 = arith.constant 0 : index
    %c0_1 = arith.constant 0 : index
    %3 = vector.load %arg7[%c0, %c0_1] : memref<16x32xf32, #tpu.memory_space<vmem>>, vector<16x32xf32>
    %c0_2 = arith.constant 0 : index
    %c0_3 = arith.constant 0 : index
    %4 = vector.load %arg3[%c0_2, %c0_3] : memref<16x32xf32, #tpu.memory_space<vmem>>, vector<16x32xf32>
    %5 = arith.truncf %4 : vector<16x32xf32> to vector<16x32xbf16>
    %c0_4 = arith.constant 0 : index
    %c0_5 = arith.constant 0 : index
    %6 = vector.load %arg4[%c0_4, %c0_5] : memref<32x32xf32, #tpu.memory_space<vmem>>, vector<32x32xf32>
    %7 = arith.truncf %6 : vector<32x32xf32> to vector<32x32xbf16>
    %cst = arith.constant dense<0.000000e+00> : vector<16x32xf32>
    %8 = tpu.matmul %5, %7, %cst {dimension_numbers = #tpu.dot_dimension_numbers<[1], [0], [0], [1], [0, 0, 1, 1], [], []>} : vector<16x32xbf16>, vector<32x32xbf16>, vector<16x32xf32> -> vector<16x32xf32>
    %9 = arith.addf %3, %8 : vector<16x32xf32>
    %c0_6 = arith.constant 0 : index
    %c0_7 = arith.constant 0 : index
    %10 = vector.load %arg7[%c0_6, %c0_7] : memref<16x32xf32, #tpu.memory_space<vmem>>, vector<16x32xf32>
    tpu.vector_store %arg7[%c0_6, %c0_7], %9 {strides = array<i32>} : memref<16x32xf32, #tpu.memory_space<vmem>>, vector<16x32xf32>,
    %c0_i32_8 = arith.constant 0 : i32
    %11 = arith.cmpi eq, %arg2, %c0_i32_8 : i32
    %12 = arith.extui %11 : i1 to i32
    %c0_i32_9 = arith.constant 0 : i32
    %13 = arith.cmpi ne, %12, %c0_i32_9 : i32
    scf.if %13 {
      %c0_10 = arith.constant 0 : index
      %c0_11 = arith.constant 0 : index
      %14 = vector.load %arg7[%c0_10, %c0_11] : memref<16x32xf32, #tpu.memory_space<vmem>>, vector<16x32xf32>
      %c0_12 = arith.constant 0 : index
      %c0_13 = arith.constant 0 : index
      %15 = vector.load %arg5[%c0_12, %c0_13] : memref<1x32xf32, #tpu.memory_space<vmem>>, vector<1x32xf32>
      %16 = vector.broadcast %15 : vector<1x32xf32> to vector<16x32xf32>
      %17 = arith.addf %14, %16 : vector<16x32xf32>
      %c0_14 = arith.constant 0 : index
      %c0_15 = arith.constant 0 : index
      %18 = vector.load %arg6[%c0_14, %c0_15] : memref<16x32xf32, #tpu.memory_space<vmem>>, vector<16x32xf32>
      tpu.vector_store %arg6[%c0_14, %c0_15], %17 {strides = array<i32>} : memref<16x32xf32, #tpu.memory_space<vmem>>, vector<16x32xf32>,
    } else {
    }
    return
  }
  func.func @transform_0(%arg0: i32, %arg1: i32, %arg2: i32) -> (i32, i32) {
    %c0_i32 = arith.constant 0 : i32
    return %arg0, %arg2 : i32, i32
  }
  func.func @transform_1(%arg0: i32, %arg1: i32, %arg2: i32) -> (i32, i32) {
    %c0_i32 = arith.constant 0 : i32
    return %arg2, %arg1 : i32, i32
  }
  func.func @transform_2(%arg0: i32, %arg1: i32, %arg2: i32) -> (i32, i32) {
    %c0_i32 = arith.constant 0 : i32
    %c0_i32_0 = arith.constant 0 : i32
    return %c0_i32, %arg1 : i32, i32
  }
  func.func @transform_3(%arg0: i32, %arg1: i32, %arg2: i32) -> (i32, i32) {
    %c0_i32 = arith.constant 0 : i32
    return %arg0, %arg1 : i32, i32
  }
}

module attributes {stable_mosaic.version = 11 : i64} {
  func.func @_glu_res_ln_kernel(%arg0: i32, %arg1: i32, %arg2: memref<16x32xf32, #tpu.memory_space<vmem>>, %arg3: memref<32x64xf32, #tpu.memory_space<vmem>>, %arg4: memref<1x64xf32, #tpu.memory_space<vmem>>, %arg5: memref<16x32xf32, #tpu.memory_space<vmem>>, %arg6: memref<1x32xf32, #tpu.memory_space<vmem>>, %arg7: memref<1x32xf32, #tpu.memory_space<vmem>>, %arg8: memref<16x32xf32, #tpu.memory_space<vmem>>, %arg9: memref<16x64xf32, #tpu.memory_space<vmem>>) attributes {dimension_semantics = [#tpu.dimension_semantics<parallel>, #tpu.dimension_semantics<arbitrary>], iteration_bounds = array<i64: 1, 1>, scalar_prefetch = 0 : i64, scratch_operands = 1 : i64, tpu.core_type = #tpu.core_type<tc>, window_params = [{transform_indices = @transform_0, window_bounds = array<i64: 16, 32>}, {transform_indices = @transform_1, window_bounds = array<i64: 32, 64>}, {pipeline_mode = #tpu.pipeline_mode<synchronous>, transform_indices = @transform_2, window_bounds = array<i64: 1, 64>}, {transform_indices = @transform_3, window_bounds = array<i64: 16, 32>}, {pipeline_mode = #tpu.pipeline_mode<synchronous>, transform_indices = @transform_4, window_bounds = array<i64: 1, 32>}, {pipeline_mode = #tpu.pipeline_mode<synchronous>, transform_indices = @transform_5, window_bounds = array<i64: 1, 32>}, {transform_indices = @transform_6, window_bounds = array<i64: 16, 32>}]} {
    %c0_i32 = arith.constant 0 : i32
    %0 = arith.cmpi eq, %arg1, %c0_i32 : i32
    %1 = arith.extui %0 : i1 to i32
    %c0_i32_0 = arith.constant 0 : i32
    %2 = arith.cmpi ne, %1, %c0_i32_0 : i32
    scf.if %2 {
      %cst_10 = arith.constant 0.000000e+00 : f32
      %14 = vector.broadcast %cst_10 : f32 to vector<16x64xf32>
      %c0_11 = arith.constant 0 : index
      %c0_12 = arith.constant 0 : index
      %15 = vector.load %arg9[%c0_11, %c0_12] : memref<16x64xf32, #tpu.memory_space<vmem>>, vector<16x64xf32>
      tpu.vector_store %arg9[%c0_11, %c0_12], %14 {strides = array<i32>} : memref<16x64xf32, #tpu.memory_space<vmem>>, vector<16x64xf32>,
    } else {
    }
    %c0 = arith.constant 0 : index
    %c0_1 = arith.constant 0 : index
    %3 = vector.load %arg9[%c0, %c0_1] : memref<16x64xf32, #tpu.memory_space<vmem>>, vector<16x64xf32>
    %c0_2 = arith.constant 0 : index
    %c0_3 = arith.constant 0 : index
    %4 = vector.load %arg2[%c0_2, %c0_3] : memref<16x32xf32, #tpu.memory_space<vmem>>, vector<16x32xf32>
    %5 = arith.truncf %4 : vector<16x32xf32> to vector<16x32xbf16>
    %c0_4 = arith.constant 0 : index
    %c0_5 = arith.constant 0 : index
    %6 = vector.load %arg3[%c0_4, %c0_5] : memref<32x64xf32, #tpu.memory_space<vmem>>, vector<32x64xf32>
    %7 = arith.truncf %6 : vector<32x64xf32> to vector<32x64xbf16>
    %cst = arith.constant dense<0.000000e+00> : vector<16x64xf32>
    %8 = tpu.matmul %5, %7, %cst {dimension_numbers = #tpu.dot_dimension_numbers<[1], [0], [0], [1], [0, 0, 1, 1], [], []>} : vector<16x32xbf16>, vector<32x64xbf16>, vector<16x64xf32> -> vector<16x64xf32>
    %9 = arith.addf %3, %8 : vector<16x64xf32>
    %c0_6 = arith.constant 0 : index
    %c0_7 = arith.constant 0 : index
    %10 = vector.load %arg9[%c0_6, %c0_7] : memref<16x64xf32, #tpu.memory_space<vmem>>, vector<16x64xf32>
    tpu.vector_store %arg9[%c0_6, %c0_7], %9 {strides = array<i32>} : memref<16x64xf32, #tpu.memory_space<vmem>>, vector<16x64xf32>,
    %c0_i32_8 = arith.constant 0 : i32
    %11 = arith.cmpi eq, %arg1, %c0_i32_8 : i32
    %12 = arith.extui %11 : i1 to i32
    %c0_i32_9 = arith.constant 0 : i32
    %13 = arith.cmpi ne, %12, %c0_i32_9 : i32
    scf.if %13 {
      %c0_10 = arith.constant 0 : index
      %c0_11 = arith.constant 0 : index
      %14 = vector.load %arg9[%c0_10, %c0_11] : memref<16x64xf32, #tpu.memory_space<vmem>>, vector<16x64xf32>
      %c0_12 = arith.constant 0 : index
      %c0_13 = arith.constant 0 : index
      %15 = vector.load %arg4[%c0_12, %c0_13] : memref<1x64xf32, #tpu.memory_space<vmem>>, vector<1x64xf32>
      %16 = vector.broadcast %15 : vector<1x64xf32> to vector<16x64xf32>
      %17 = arith.addf %14, %16 : vector<16x64xf32>
      %18 = vector.extract_strided_slice %17 {offsets = [0, 0], sizes = [16, 32], strides = [1, 1]} : vector<16x64xf32> to vector<16x32xf32>
      %19 = vector.extract_strided_slice %17 {offsets = [0, 32], sizes = [16, 32], strides = [1, 1]} : vector<16x64xf32> to vector<16x32xf32>
      %20 = arith.negf %19 : vector<16x32xf32>
      %21 = math.exp %20 : vector<16x32xf32>
      %cst_14 = arith.constant 1.000000e+00 : f32
      %22 = vector.broadcast %cst_14 : f32 to vector<16x32xf32>
      %23 = arith.addf %22, %21 : vector<16x32xf32>
      %24 = arith.divf %22, %23 : vector<16x32xf32>
      %25 = arith.mulf %18, %24 : vector<16x32xf32>
      %c0_15 = arith.constant 0 : index
      %c0_16 = arith.constant 0 : index
      %26 = vector.load %arg5[%c0_15, %c0_16] : memref<16x32xf32, #tpu.memory_space<vmem>>, vector<16x32xf32>
      %27 = arith.addf %25, %26 : vector<16x32xf32>
      %cst_17 = arith.constant dense<0.000000e+00> : vector<16xf32>
      %28 = vector.multi_reduction <add>, %27, %cst_17 [1] : vector<16x32xf32> to vector<16xf32>
      %29 = vector.shape_cast %28 : vector<16xf32> to vector<16x1xf32>
      %cst_18 = arith.constant 3.200000e+01 : f32
      %30 = vector.broadcast %cst_18 : f32 to vector<16x1xf32>
      %31 = arith.divf %29, %30 : vector<16x1xf32>
      %32 = vector.broadcast %31 : vector<16x1xf32> to vector<16x32xf32>
      %33 = arith.subf %27, %32 : vector<16x32xf32>
      %34 = arith.mulf %33, %33 : vector<16x32xf32>
      %cst_19 = arith.constant dense<0.000000e+00> : vector<16xf32>
      %35 = vector.multi_reduction <add>, %34, %cst_19 [1] : vector<16x32xf32> to vector<16xf32>
      %36 = vector.shape_cast %35 : vector<16xf32> to vector<16x1xf32>
      %cst_20 = arith.constant 3.200000e+01 : f32
      %37 = vector.broadcast %cst_20 : f32 to vector<16x1xf32>
      %38 = arith.divf %36, %37 : vector<16x1xf32>
      %39 = vector.broadcast %31 : vector<16x1xf32> to vector<16x32xf32>
      %40 = arith.subf %27, %39 : vector<16x32xf32>
      %cst_21 = arith.constant 9.99999974E-6 : f32
      %41 = vector.broadcast %cst_21 : f32 to vector<16x1xf32>
      %42 = arith.addf %38, %41 : vector<16x1xf32>
      %43 = math.rsqrt %42 : vector<16x1xf32>
      %44 = vector.broadcast %43 : vector<16x1xf32> to vector<16x32xf32>
      %45 = arith.mulf %40, %44 : vector<16x32xf32>
      %c0_22 = arith.constant 0 : index
      %c0_23 = arith.constant 0 : index
      %46 = vector.load %arg6[%c0_22, %c0_23] : memref<1x32xf32, #tpu.memory_space<vmem>>, vector<1x32xf32>
      %47 = vector.broadcast %46 : vector<1x32xf32> to vector<16x32xf32>
      %48 = arith.mulf %45, %47 : vector<16x32xf32>
      %c0_24 = arith.constant 0 : index
      %c0_25 = arith.constant 0 : index
      %49 = vector.load %arg7[%c0_24, %c0_25] : memref<1x32xf32, #tpu.memory_space<vmem>>, vector<1x32xf32>
      %50 = vector.broadcast %49 : vector<1x32xf32> to vector<16x32xf32>
      %51 = arith.addf %48, %50 : vector<16x32xf32>
      %c0_26 = arith.constant 0 : index
      %c0_27 = arith.constant 0 : index
      %52 = vector.load %arg8[%c0_26, %c0_27] : memref<16x32xf32, #tpu.memory_space<vmem>>, vector<16x32xf32>
      tpu.vector_store %arg8[%c0_26, %c0_27], %51 {strides = array<i32>} : memref<16x32xf32, #tpu.memory_space<vmem>>, vector<16x32xf32>,
    } else {
    }
    return
  }
  func.func @transform_0(%arg0: i32, %arg1: i32) -> (i32, i32) {
    %c0_i32 = arith.constant 0 : i32
    return %arg0, %arg1 : i32, i32
  }
  func.func @transform_1(%arg0: i32, %arg1: i32) -> (i32, i32) {
    %c0_i32 = arith.constant 0 : i32
    %c0_i32_0 = arith.constant 0 : i32
    return %arg1, %c0_i32 : i32, i32
  }
  func.func @transform_2(%arg0: i32, %arg1: i32) -> (i32, i32) {
    %c0_i32 = arith.constant 0 : i32
    %c0_i32_0 = arith.constant 0 : i32
    %c0_i32_1 = arith.constant 0 : i32
    return %c0_i32, %c0_i32_0 : i32, i32
  }
  func.func @transform_3(%arg0: i32, %arg1: i32) -> (i32, i32) {
    %c0_i32 = arith.constant 0 : i32
    %c0_i32_0 = arith.constant 0 : i32
    return %arg0, %c0_i32 : i32, i32
  }
  func.func @transform_4(%arg0: i32, %arg1: i32) -> (i32, i32) {
    %c0_i32 = arith.constant 0 : i32
    %c0_i32_0 = arith.constant 0 : i32
    %c0_i32_1 = arith.constant 0 : i32
    return %c0_i32, %c0_i32_0 : i32, i32
  }
  func.func @transform_5(%arg0: i32, %arg1: i32) -> (i32, i32) {
    %c0_i32 = arith.constant 0 : i32
    %c0_i32_0 = arith.constant 0 : i32
    %c0_i32_1 = arith.constant 0 : i32
    return %c0_i32, %c0_i32_0 : i32, i32
  }
  func.func @transform_6(%arg0: i32, %arg1: i32) -> (i32, i32) {
    %c0_i32 = arith.constant 0 : i32
    %c0_i32_0 = arith.constant 0 : i32
    return %arg0, %c0_i32 : i32, i32
  }
}

module attributes {stable_mosaic.version = 11 : i64} {
  func.func @_linear_kernel(%arg0: i32, %arg1: i32, %arg2: i32, %arg3: memref<2x32xf32, #tpu.memory_space<vmem>>, %arg4: memref<32x4xf32, #tpu.memory_space<vmem>>, %arg5: memref<1x4xf32, #tpu.memory_space<vmem>>, %arg6: memref<2x4xf32, #tpu.memory_space<vmem>>, %arg7: memref<2x4xf32, #tpu.memory_space<vmem>>) attributes {dimension_semantics = [#tpu.dimension_semantics<parallel>, #tpu.dimension_semantics<parallel>, #tpu.dimension_semantics<arbitrary>], iteration_bounds = array<i64: 1, 1, 1>, scalar_prefetch = 0 : i64, scratch_operands = 1 : i64, tpu.core_type = #tpu.core_type<tc>, window_params = [{transform_indices = @transform_0, window_bounds = array<i64: 2, 32>}, {transform_indices = @transform_1, window_bounds = array<i64: 32, 4>}, {transform_indices = @transform_2, window_bounds = array<i64: 1, 4>}, {transform_indices = @transform_3, window_bounds = array<i64: 2, 4>}]} {
    %c0_i32 = arith.constant 0 : i32
    %0 = arith.cmpi eq, %arg2, %c0_i32 : i32
    %1 = arith.extui %0 : i1 to i32
    %c0_i32_0 = arith.constant 0 : i32
    %2 = arith.cmpi ne, %1, %c0_i32_0 : i32
    scf.if %2 {
      %cst_10 = arith.constant 0.000000e+00 : f32
      %14 = vector.broadcast %cst_10 : f32 to vector<2x4xf32>
      %c0_11 = arith.constant 0 : index
      %c0_12 = arith.constant 0 : index
      %15 = vector.load %arg7[%c0_11, %c0_12] : memref<2x4xf32, #tpu.memory_space<vmem>>, vector<2x4xf32>
      tpu.vector_store %arg7[%c0_11, %c0_12], %14 {strides = array<i32>} : memref<2x4xf32, #tpu.memory_space<vmem>>, vector<2x4xf32>,
    } else {
    }
    %c0 = arith.constant 0 : index
    %c0_1 = arith.constant 0 : index
    %3 = vector.load %arg7[%c0, %c0_1] : memref<2x4xf32, #tpu.memory_space<vmem>>, vector<2x4xf32>
    %c0_2 = arith.constant 0 : index
    %c0_3 = arith.constant 0 : index
    %4 = vector.load %arg3[%c0_2, %c0_3] : memref<2x32xf32, #tpu.memory_space<vmem>>, vector<2x32xf32>
    %5 = arith.truncf %4 : vector<2x32xf32> to vector<2x32xbf16>
    %c0_4 = arith.constant 0 : index
    %c0_5 = arith.constant 0 : index
    %6 = vector.load %arg4[%c0_4, %c0_5] : memref<32x4xf32, #tpu.memory_space<vmem>>, vector<32x4xf32>
    %7 = arith.truncf %6 : vector<32x4xf32> to vector<32x4xbf16>
    %cst = arith.constant dense<0.000000e+00> : vector<2x4xf32>
    %8 = tpu.matmul %5, %7, %cst {dimension_numbers = #tpu.dot_dimension_numbers<[1], [0], [0], [1], [0, 0, 1, 1], [], []>} : vector<2x32xbf16>, vector<32x4xbf16>, vector<2x4xf32> -> vector<2x4xf32>
    %9 = arith.addf %3, %8 : vector<2x4xf32>
    %c0_6 = arith.constant 0 : index
    %c0_7 = arith.constant 0 : index
    %10 = vector.load %arg7[%c0_6, %c0_7] : memref<2x4xf32, #tpu.memory_space<vmem>>, vector<2x4xf32>
    tpu.vector_store %arg7[%c0_6, %c0_7], %9 {strides = array<i32>} : memref<2x4xf32, #tpu.memory_space<vmem>>, vector<2x4xf32>,
    %c0_i32_8 = arith.constant 0 : i32
    %11 = arith.cmpi eq, %arg2, %c0_i32_8 : i32
    %12 = arith.extui %11 : i1 to i32
    %c0_i32_9 = arith.constant 0 : i32
    %13 = arith.cmpi ne, %12, %c0_i32_9 : i32
    scf.if %13 {
      %c0_10 = arith.constant 0 : index
      %c0_11 = arith.constant 0 : index
      %14 = vector.load %arg7[%c0_10, %c0_11] : memref<2x4xf32, #tpu.memory_space<vmem>>, vector<2x4xf32>
      %c0_12 = arith.constant 0 : index
      %c0_13 = arith.constant 0 : index
      %15 = vector.load %arg5[%c0_12, %c0_13] : memref<1x4xf32, #tpu.memory_space<vmem>>, vector<1x4xf32>
      %16 = vector.broadcast %15 : vector<1x4xf32> to vector<2x4xf32>
      %17 = arith.addf %14, %16 : vector<2x4xf32>
      %c0_14 = arith.constant 0 : index
      %c0_15 = arith.constant 0 : index
      %18 = vector.load %arg6[%c0_14, %c0_15] : memref<2x4xf32, #tpu.memory_space<vmem>>, vector<2x4xf32>
      tpu.vector_store %arg6[%c0_14, %c0_15], %17 {strides = array<i32>} : memref<2x4xf32, #tpu.memory_space<vmem>>, vector<2x4xf32>,
    } else {
    }
    return
  }
  func.func @transform_0(%arg0: i32, %arg1: i32, %arg2: i32) -> (i32, i32) {
    %c0_i32 = arith.constant 0 : i32
    return %arg0, %arg2 : i32, i32
  }
  func.func @transform_1(%arg0: i32, %arg1: i32, %arg2: i32) -> (i32, i32) {
    %c0_i32 = arith.constant 0 : i32
    return %arg2, %arg1 : i32, i32
  }
  func.func @transform_2(%arg0: i32, %arg1: i32, %arg2: i32) -> (i32, i32) {
    %c0_i32 = arith.constant 0 : i32
    %c0_i32_0 = arith.constant 0 : i32
    return %c0_i32, %arg1 : i32, i32
  }
  func.func @transform_3(%arg0: i32, %arg1: i32, %arg2: i32) -> (i32, i32) {
    %c0_i32 = arith.constant 0 : i32
    return %arg0, %arg1 : i32, i32
  }
}

</mosaic_0001>

<bundles_post_ra>
// kernel: s4_model_forward.7
= control target key start
LH: loop header
LB: loop body
LE: loop exit
PB: predicated region body
PF: predicated region fallthrough
CT: control target
= control target key end

     0   :  { %s635_s12 = smov 0   ;;  %s637_s13 = smov 0   ;;  %s781_s0 = inlined_call_operand.vmem [shape: f32[2,8,32], index: 0, kind: input, shape index: {}]   ;;  %s782_s1 = inlined_call_operand.vmem [shape: f32[8,8,32], index: 1, kind: input, shape index: {}]   ;;  %s783_s2 = inlined_call_operand.vmem [shape: f32[1,32], index: 2, kind: input, shape index: {}]   ;;  %s784_s3 = inlined_call_operand.vmem [shape: f32[2,8,32], index: 3, kind: output, shape index: {}]  }
   0x1   :  { %s639_s14 = smov 0  }
   0x2 LB: > { %s25_s15 = sadd.s32 1, %s609_s13  ;;  %p545_p0 = scmp.ge.s32.totalorder %s613_s14, 1  ;;  %s613_s14 = sphi %s639_s14, %s13_s14   ;;  %s609_s13 = sphi %s637_s13, %s786_s13   ;;  %s605_s12 = sphi %s635_s12, %s785_s12  }
   0x3   : > { %p27_p1 = scmp.ge.s32.totalorder %s25_s15, 2  ;;  %p172_p2 = scmp.lt.s32.totalorder %s613_s14, 3 }
   0x5   : > { %s788_s15 = smov (%p27_p1, %s25_s15), 0  ;;  %p173_p3 = pnand %p545_p0, %p172_p2 }
   0x6   : > { %p207_p4 = scmp.lt.s32.totalorder (!%p173_p3), %s605_s12, 1  ;;  %v229_v0 = vld [vmem:[%s782_s1] sm:$0xff] (!%p173_p3)  ;;  %v230_v1 = vld [vmem:[%s782_s1 + $0x8] sm:$0xff] (!%p173_p3)  ;;  %v231_v2 = vld [vmem:[%s782_s1 + $0x10] sm:$0xff] (!%p173_p3)  ;;  %vm245_vm0 = vcmask (!%p173_p3), 261120   ;;  %vm415_vm1 = vcmask (!%p173_p3), 1041409  }
   0x7   : > { %176 = sbr.rel (%p173_p3) target bundleno = 76 (0x4c), region = 32  ;;  %v232_v3 = vld [vmem:[%s782_s1 + $0x18] sm:$0xff] (!%p173_p3)  ;;  %v233_v4 = vld [vmem:[%s782_s1 + $0x20] sm:$0xff] (!%p173_p3)  ;;  %v234_v5 = vld [vmem:[%s782_s1 + $0x28] sm:$0xff] (!%p173_p3)  ;;  %vm418_vm2 = vcmask (!%p173_p3), 1042434   ;;  %vm421_vm3 = vcmask (!%p173_p3), 1043459  }
   0x8   : > { %v235_v6 = vld [vmem:[%s782_s1 + $0x30] sm:$0xff] (!%p173_p3)  ;;  %v236_v7 = vld [vmem:[%s782_s1 + $0x38] sm:$0xff] (!%p173_p3)  ;;  %v548_v61 = vld [vmem:[%s783_s2] ss:$0 sm:$0xff] (!%p173_p3)  ;;  %vm424_vm4 = vcmask (!%p173_p3), 1044484   ;;  %vm427_vm5 = vcmask (!%p173_p3), 1045509  }
   0x9   : > { %vm430_vm6 = vcmask (!%p173_p3), 1046534   ;;  %vm433_vm7 = vcmask (!%p173_p3), 1047559  }
   0xe   : > { %s790_s12 = smov (!%p207_p4, %s605_s12), 1 }
   0xf   : > { %s546_s20 = sshll.u32 %s790_s12, 3 }
  0x10   : > { %s213_s29 = scalar_lea.vmem %s781_s0, %s546_s20  ;;  %s227_s17 = scalar_lea.vmem %s784_s3, %s546_s20 }
  0x11   : > { %v685_v8 = vld [vmem:[%s213_s29] sm:$0xff] }
  0x12   : > { %v237_v9 = vmul.f32 %v229_v0, %v685_v8  ;;  %v238_v10 = vmul.f32 %v230_v1, %v685_v8  ;;  %v239_v11 = vmul.f32 %v231_v2, %v685_v8  ;;  %v240_v12 = vmul.f32 %v232_v3, %v685_v8 }
  0x13   : > { %v241_v13 = vmul.f32 %v233_v4, %v685_v8  ;;  %v242_v14 = vmul.f32 %v234_v5, %v685_v8  ;;  %v243_v15 = vmul.f32 %v235_v6, %v685_v8  ;;  %v244_v16 = vmul.f32 %v236_v7, %v685_v8 }
  0x14   : > { %v246_v17 = vsel %vm245_vm0, %v237_v9, 0.0  ;;  %v253_v18 = vsel %vm245_vm0, %v238_v10, 0.0  ;;  %v260_v19 = vsel %vm245_vm0, %v239_v11, 0.0  ;;  %v267_v20 = vsel %vm245_vm0, %v240_v12, 0.0 }
  0x15   : > { %v247_v21 = vrot.slane %v246_v17, 4  ;;  %v254_v22 = vrot.slane %v253_v18, 4  ;;  %v261_v23 = vrot.slane %v260_v19, 4  ;;  %v268_v24 = vrot.slane %v267_v20, 4 }
  0x16   : > { %v274_v25 = vsel %vm245_vm0, %v241_v13, 0.0  ;;  %v281_v26 = vsel %vm245_vm0, %v242_v14, 0.0  ;;  %v288_v27 = vsel %vm245_vm0, %v243_v15, 0.0  ;;  %v295_v28 = vsel %vm245_vm0, %v244_v16, 0.0 }
  0x17   : > { %v248_v29 = vadd.f32 %v247_v21, %v246_v17  ;;  %v255_v30 = vadd.f32 %v254_v22, %v253_v18  ;;  %v262_v31 = vadd.f32 %v261_v23, %v260_v19  ;;  %v269_v32 = vadd.f32 %v268_v24, %v267_v20 }
  0x18   : > { %v275_v33 = vrot.slane %v274_v25, 4  ;;  %v282_v34 = vrot.slane %v281_v26, 4  ;;  %v289_v35 = vrot.slane %v288_v27, 4  ;;  %v296_v36 = vrot.slane %v295_v28, 4 }
  0x19   : > { %v249_v37 = vrot.slane %v248_v29, 2  ;;  %v256_v38 = vrot.slane %v255_v30, 2  ;;  %v263_v39 = vrot.slane %v262_v31, 2  ;;  %v270_v40 = vrot.slane %v269_v32, 2 }
  0x1a   : > { %v276_v41 = vadd.f32 %v275_v33, %v274_v25  ;;  %v283_v42 = vadd.f32 %v282_v34, %v281_v26  ;;  %v290_v43 = vadd.f32 %v289_v35, %v288_v27  ;;  %v297_v44 = vadd.f32 %v296_v36, %v295_v28 }
  0x1b   : > { %v250_v45 = vadd.f32 %v249_v37, %v248_v29  ;;  %v257_v46 = vadd.f32 %v256_v38, %v255_v30  ;;  %v264_v47 = vadd.f32 %v263_v39, %v262_v31  ;;  %v271_v48 = vadd.f32 %v270_v40, %v269_v32 }
  0x1c   : > { %v277_v49 = vrot.slane %v276_v41, 2  ;;  %v284_v50 = vrot.slane %v283_v42, 2  ;;  %v291_v51 = vrot.slane %v290_v43, 2  ;;  %v298_v52 = vrot.slane %v297_v44, 2 }
  0x1d   : > { %v251_v53 = vrot.slane %v250_v45, 1  ;;  %v258_v54 = vrot.slane %v257_v46, 1  ;;  %v265_v55 = vrot.slane %v264_v47, 1  ;;  %v272_v56 = vrot.slane %v271_v48, 1 }
  0x1e   : > { %v278_v57 = vadd.f32 %v277_v49, %v276_v41  ;;  %v285_v58 = vadd.f32 %v284_v50, %v283_v42  ;;  %v292_v59 = vadd.f32 %v291_v51, %v290_v43  ;;  %v299_v60 = vadd.f32 %v298_v52, %v297_v44 }
  0x1f   : > { %v252_v62 = vadd.f32 %v251_v53, %v250_v45  ;;  %v259_v3 = vadd.f32 %v258_v54, %v257_v46  ;;  %v266_v4 = vadd.f32 %v265_v55, %v264_v47  ;;  %v273_v5 = vadd.f32 %v272_v56, %v271_v48 }
  0x20   : > { %v279_v63 = vrot.slane %v278_v57, 1  ;;  %v286_v0 = vrot.slane %v285_v58, 1  ;;  %v293_v1 = vrot.slane %v292_v59, 1  ;;  %v300_v2 = vrot.slane %v299_v60, 1 }
  0x21   : > { %v309_v6 = vmul.f32 %v548_v61, %v685_v8 }
  0x22   : > { %v280_v7 = vadd.f32 %v279_v63, %v278_v57  ;;  %v287_v9 = vadd.f32 %v286_v0, %v285_v58  ;;  %v294_v10 = vadd.f32 %v293_v1, %v292_v59  ;;  %v301_v11 = vadd.f32 %v300_v2, %v299_v60 }
  0x23   : > { %v311_v12 = vrot.slane %v309_v6, 1  ;;  %v312_v13 = vrot.slane %v309_v6, 2  ;;  %v313_v14 = vrot.slane %v309_v6, 3  ;;  %v314_v15 = vrot.slane %v309_v6, 4 }
  0x24   : > { %v315_v16 = vrot.slane %v309_v6, 5  ;;  %v316_v17 = vrot.slane %v309_v6, 6  ;;  %v317_v18 = vrot.slane %v309_v6, 7  ;;  %v707_v19 = vadd.f32 %v309_v6, %v252_v62 }
  0x25   : > { %v709_v20 = vadd.f32 %v311_v12, %v259_v3  ;;  %v711_v21 = vadd.f32 %v312_v13, %v266_v4  ;;  %v713_v22 = vadd.f32 %v313_v14, %v273_v5  ;;  %v715_v8 = vadd.f32 %v314_v15, %v280_v7 }
  0x26   : > { %v717_v23 = vadd.f32 %v315_v16, %v287_v9  ;;  %v719_v24 = vadd.f32 %v316_v17, %v294_v10  ;;  %v721_v25 = vadd.f32 %v317_v18, %v301_v11  ;;  %v334_v26 = vmul.f32 %v707_v19, %v707_v19 }
  0x27   : > { %v335_v27 = vmul.f32 %v709_v20, %v709_v20  ;;  %v336_v28 = vmul.f32 %v711_v21, %v711_v21  ;;  %v337_v29 = vmul.f32 %v713_v22, %v713_v22  ;;  %v338_v30 = vmul.f32 %v715_v8, %v715_v8 }
  0x28   : > { %v339_v31 = vmul.f32 %v717_v23, %v717_v23  ;;  %v340_v32 = vmul.f32 %v719_v24, %v719_v24  ;;  %v341_v33 = vmul.f32 %v721_v25, %v721_v25  ;;  %v342_v34 = vmul.f32 %v334_v26, %v707_v19 }
  0x29   : > { %v343_v35 = vmul.f32 %v335_v27, %v709_v20  ;;  %v344_v36 = vmul.f32 %v336_v28, %v711_v21  ;;  %v345_v37 = vmul.f32 %v337_v29, %v713_v22  ;;  %v346_v38 = vmul.f32 %v338_v30, %v715_v8 }
  0x2a   : > { %v347_v39 = vmul.f32 %v339_v31, %v717_v23  ;;  %v348_v40 = vmul.f32 %v340_v32, %v719_v24  ;;  %v349_v41 = vmul.f32 %v341_v33, %v721_v25  ;;  %v350_v42 = vmul.f32 0.044715, %v342_v34 }
  0x2b   : > { %v351_v43 = vmul.f32 0.044715, %v343_v35  ;;  %v352_v44 = vmul.f32 0.044715, %v344_v36  ;;  %v353_v45 = vmul.f32 0.044715, %v345_v37 }
  0x2c   : > { %v354_v46 = vmul.f32 0.044715, %v346_v38  ;;  %v355_v47 = vmul.f32 0.044715, %v347_v39  ;;  %v356_v48 = vmul.f32 0.044715, %v348_v40  ;;  %v358_v49 = vadd.f32 %v350_v42, %v707_v19 }
  0x2d   : > { %v357_v50 = vmul.f32 0.044715, %v349_v41  ;;  %v359_v51 = vadd.f32 %v351_v43, %v709_v20  ;;  %v360_v52 = vadd.f32 %v352_v44, %v711_v21  ;;  %v361_v53 = vadd.f32 %v353_v45, %v713_v22 }
  0x2e   : > { %v362_v54 = vadd.f32 %v354_v46, %v715_v8  ;;  %v363_v55 = vadd.f32 %v355_v47, %v717_v23  ;;  %v364_v56 = vadd.f32 %v356_v48, %v719_v24  ;;  %v366_v57 = vmul.f32 0.7978846, %v358_v49 }
  0x2f   : > { %v365_v58 = vadd.f32 %v357_v50, %v721_v25  ;;  %v367_v59 = vmul.f32 0.7978846, %v359_v51  ;;  %v368_v60 = vmul.f32 0.7978846, %v360_v52  ;;  %v369_v61 = vmul.f32 0.7978846, %v361_v53 }
  0x30   : > { %v370_v62 = vmul.f32 0.7978846, %v362_v54  ;;  %575 = vtanh.f32 %v366_v57  ;;  %v371_v63 = vmul.f32 0.7978846, %v363_v55  ;;  %v372_v0 = vmul.f32 0.7978846, %v364_v56 }
  0x31   : > { %577 = vtanh.f32 %v367_v59  ;;  %v373_v1 = vmul.f32 0.7978846, %v365_v58 }
  0x32   : > { %579 = vtanh.f32 %v368_v60 }
  0x33   : > { %581 = vtanh.f32 %v369_v61 }
  0x34   : > { %583 = vtanh.f32 %v370_v62 }
  0x35   : > { %585 = vtanh.f32 %v371_v63 }
  0x36   : > { %587 = vtanh.f32 %v372_v0 }
  0x37   : > { %589 = vtanh.f32 %v373_v1 }
  0x3a   : > { %v576_v2 = vpop.eup %575 }
  0x3b   : > { %v578_v3 = vpop.eup %577  ;;  %v382_v4 = vadd.f32 1.0, %v576_v2 }
  0x3c   : > { %v580_v5 = vpop.eup %579  ;;  %v383_v6 = vadd.f32 1.0, %v578_v3 }
  0x3d   : > { %v582_v7 = vpop.eup %581  ;;  %v384_v9 = vadd.f32 1.0, %v580_v5  ;;  %v390_v10 = vmul.f32 0.5, %v382_v4 }
  0x3e   : > { %v584_v11 = vpop.eup %583  ;;  %v385_v12 = vadd.f32 1.0, %v582_v7  ;;  %v391_v13 = vmul.f32 0.5, %v383_v6 }
  0x3f   : > { %v586_v14 = vpop.eup %585  ;;  %v386_v15 = vadd.f32 1.0, %v584_v11  ;;  %v392_v16 = vmul.f32 0.5, %v384_v9  ;;  %v398_v27 = vmul.f32 %v390_v10, %v707_v19 }
  0x40   : > { %v588_v17 = vpop.eup %587  ;;  %v387_v18 = vadd.f32 1.0, %v586_v14  ;;  %v393_v26 = vmul.f32 0.5, %v385_v12  ;;  %v399_v28 = vmul.f32 %v391_v13, %v709_v20 }
  0x41   : > { %v590_v29 = vpop.eup %589  ;;  %v388_v30 = vadd.f32 1.0, %v588_v17  ;;  %v394_v31 = vmul.f32 0.5, %v386_v15  ;;  %v400_v32 = vmul.f32 %v392_v16, %v711_v21 }
  0x42   : > { %v389_v33 = vadd.f32 1.0, %v590_v29  ;;  %v395_v34 = vmul.f32 0.5, %v387_v18  ;;  %v401_v35 = vmul.f32 %v393_v26, %v713_v22  ;;  %v414_v36 = vrot.slane %v399_v28, 7 }
  0x43   : > { %v396_v37 = vmul.f32 0.5, %v388_v30  ;;  %v402_v38 = vmul.f32 %v394_v31, %v715_v8  ;;  %v417_v39 = vrot.slane %v400_v32, 6 }
  0x44   : > { %v397_v19 = vmul.f32 0.5, %v389_v33  ;;  %v403_v20 = vmul.f32 %v395_v34, %v717_v23  ;;  %v416_v40 = vsel %vm415_vm1, %v414_v36, %v398_v27  ;;  %v420_v41 = vrot.slane %v401_v35, 5 }
  0x45   : > { %v404_v21 = vmul.f32 %v396_v37, %v719_v24  ;;  %v419_v42 = vsel %vm418_vm2, %v417_v39, %v416_v40  ;;  %v423_v43 = vrot.slane %v402_v38, 4 }
  0x46   : > { %v405_v22 = vmul.f32 %v397_v19, %v721_v25  ;;  %v422_v44 = vsel %vm421_vm3, %v420_v41, %v419_v42  ;;  %v426_v8 = vrot.slane %v403_v20, 3 }
  0x47   : > { %v425_v45 = vsel %vm424_vm4, %v423_v43, %v422_v44  ;;  %v429_v46 = vrot.slane %v404_v21, 2 }
  0x48   : > { %v428_v23 = vsel %vm427_vm5, %v426_v8, %v425_v45  ;;  %v432_v24 = vrot.slane %v405_v22, 1 }
  0x49   : > { %v431_v47 = vsel %vm430_vm6, %v429_v46, %v428_v23 }
  0x4a   : > { %v434_v48 = vsel %vm433_vm7, %v432_v24, %v431_v47 }
  0x4b   : > { %436 = vst.msk [vmem:[%s227_s17] sm:$0xff] %vm245_vm0, %v434_v48 }
  0x4c PF: > { %s13_s14 = sadd.s32 1, %s613_s14   ;;  %s785_s12 = smov %s609_s13 }
  0x4d   : > { %p10_p5 = scmp.ge.s32.totalorder %s13_s14, 4   ;;  %s786_s13 = smov %s788_s15 }
  0x4f   :  { %12 = sbr.rel (!%p10_p5) target bundleno = 2 (0x2), region = 68 }

// kernel: s4_model_forward.6
= control target key start
LH: loop header
LB: loop body
LE: loop exit
PB: predicated region body
PF: predicated region fallthrough
CT: control target
= control target key end

     0   :  { %vm19_vm0 = vcmask 261120   ;;  %v117_v0 = vmov 0.0   ;;  %vm118_vm1 = vmmov 0   ;;  %s173_s1 = inlined_call_operand.vmem [shape: f32[32,32], index: 1, kind: input, shape index: {}]   ;;  %s174_s0 = inlined_call_operand.vmem [shape: f32[16,32], index: 0, kind: input, shape index: {}]   ;;  %s175_s2 = inlined_call_operand.vmem [shape: f32[1,32], index: 2, kind: input, shape index: {}]   ;;  %s176_s3 = inlined_call_operand.vmem [shape: f32[16,32], index: 3, kind: output, shape index: {}]  }
   0x1   :  { %107 = vmatprep.subr.bf16.mxu0 %v117_v0  ;;  %v27_v1 = vld [vmem:[%s173_s1] sm:$0xff]  ;;  %v28_v2 = vld [vmem:[%s173_s1 + $0x8] sm:$0xff]  ;;  %v29_v3 = vld [vmem:[%s173_s1 + $0x10] sm:$0xff]  ;;  %111 = vmatprep.mubr.msk.bf16.mxu0 %vm118_vm1, %v117_v0  ;;  %20 = vst.msk [vmem:[#allocation2] sm:$0xff] %vm19_vm0, %v117_v0 }
   0x2   :  { %21 = vst.msk [vmem:[#allocation2 + $0x8] sm:$0xff] %vm19_vm0, %v117_v0  ;;  %v31_v4 = vpack.c.bf16 %v28_v2, %v27_v1  ;;  %v30_v5 = vld [vmem:[%s173_s1 + $0x18] sm:$0xff]  ;;  %v24_v7 = vld [vmem:[%s174_s0] sm:$0xff]  ;;  %v25_v8 = vld [vmem:[%s174_s0 + $0x8] sm:$0xff] }
   0x3   :  { %v32_v6 = vpack.c.bf16 %v30_v5, %v29_v3  ;;  %v26_v9 = vpack.c.bf16 %v25_v8, %v24_v7  ;;  %v103_v18 = vld [vmem:[%s175_s2] ss:$0 sm:$0xff] }
   0x4   :  { %108 = vmatpush3.bf16.msra.mxu0 %v31_v4 }
   0x5   :  { %109 = vmatprep.subr.bf16.mxu0 %v117_v0 }
   0x8   :  { %110 = vmatpush3.bf16.msra.mxu0 %v32_v6  ;;  %v22_v10 = vld [vmem:[#allocation2] sm:$0xff] }
   0x9   :  { %v23_v12 = vld [vmem:[#allocation2 + $0x8] sm:$0xff] }
   0xb   :  { %112 = vmatmul.mubr.msk.bf16.vlgmr.msra.gmra.mrb[0].mxu0 %vm19_vm0, %v26_v9 }
  0xde   :  { %v71_v11 = vpop.f32.mrb[0].mxu0 }
  0xdf   :  { %v78_v13 = vadd.f32 %v71_v11, %v22_v10  ;;  %v113_v14 = vpop.f32.mrb[1].mxu0 }
  0xe0   :  { %v74_v15 = vpop.f32.mrb[2].mxu0 }
  0xe1   :  { %80 = vst.msk [vmem:[#allocation2] sm:$0xff] %vm19_vm0, %v78_v13  ;;  %v79_v16 = vadd.f32 %v74_v15, %v23_v12  ;;  %v114_v17 = vpop.f32.mrb[3].mxu0 }
  0xe3   :  { %81 = vst.msk [vmem:[#allocation2 + $0x8] sm:$0xff] %vm19_vm0, %v79_v16 }
  0xe8   :  { %v85_v19 = vld [vmem:[#allocation2] sm:$0xff] }
  0xe9   :  { %v94_v20 = vadd.f32 %v103_v18, %v85_v19 }
  0xea   :  { %v86_v21 = vld [vmem:[#allocation2 + $0x8] sm:$0xff] }
  0xeb   :  { %96 = vst.msk [vmem:[%s176_s3] sm:$0xff] %vm19_vm0, %v94_v20  ;;  %v95_v22 = vadd.f32 %v103_v18, %v86_v21 }
  0xed   :  { %97 = vst.msk [vmem:[%s176_s3 + $0x8] sm:$0xff] %vm19_vm0, %v95_v22 }

// kernel: s4_model_forward.8
= control target key start
LH: loop header
LB: loop body
LE: loop exit
PB: predicated region body
PF: predicated region fallthrough
CT: control target
= control target key end

     0   :  { %vm28_vm0 = vcmask 523264   ;;  %v215_v0 = vmov 0.0   ;;  %vm216_vm1 = vmmov 0   ;;  %vm42_vm2 = vcmask 261120   ;;  %s217_s9 = smov 96   ;;  %s303_s1 = inlined_call_operand.vmem [shape: f32[32,64], index: 1, kind: input, shape index: {}]   ;;  %s304_s0 = inlined_call_operand.vmem [shape: f32[16,32], index: 0, kind: input, shape index: {}]   ;;  %s305_s2 = inlined_call_operand.vmem [shape: f32[1,64], index: 2, kind: input, shape index: {}]   ;;  %s306_s3 = inlined_call_operand.vmem [shape: f32[16,32], index: 3, kind: input, shape index: {}]   ;;  %s307_s4 = inlined_call_operand.vmem [shape: f32[1,32], index: 4, kind: input, shape index: {}]   ;;  %s308_s5 = inlined_call_operand.vmem [shape: f32[1,32], index: 5, kind: input, shape index: {}]   ;;  %s309_s6 = inlined_call_operand.vmem [shape: f32[16,32], index: 6, kind: output, shape index: {}]  }
   0x1   :  { %192 = vmatprep.subr.bf16.mxu0 %v215_v0  ;;  %v36_v1 = vld [vmem:[%s303_s1] sm:$0xff]  ;;  %v37_v2 = vld [vmem:[%s303_s1 + $0x8] sm:$0xff]  ;;  %v38_v3 = vld [vmem:[%s303_s1 + $0x10] sm:$0xff]  ;;  %196 = vmatprep.mubr.msk.bf16.mxu0 %vm216_vm1, %v215_v0  ;;  %29 = vst.msk [vmem:[#allocation2] sm:$0xff] %vm28_vm0, %v215_v0 }
   0x2   :  { %30 = vst.msk [vmem:[#allocation2 + $0x8] sm:$0xff] %vm28_vm0, %v215_v0  ;;  %v40_v4 = vpack.c.bf16 %v37_v2, %v36_v1  ;;  %v39_v5 = vld [vmem:[%s303_s1 + $0x18] sm:$0xff]  ;;  %v33_v7 = vld [vmem:[%s304_s0] sm:$0xff]  ;;  %v34_v8 = vld [vmem:[%s304_s0 + $0x8] sm:$0xff] }
   0x3   :  { %v41_v6 = vpack.c.bf16 %v39_v5, %v38_v3  ;;  %v35_v9 = vpack.c.bf16 %v34_v8, %v33_v7  ;;  %v184_v18 = vld [vmem:[%s305_s2] ss:$0 sm:$0xff]  ;;  %v129_v36 = vld [vmem:[%s306_s3 + $0x8] sm:$0xff] }
   0x4   :  { %193 = vmatpush3.bf16.msra.mxu0 %v40_v4  ;;  %v128_v32 = vld [vmem:[%s306_s3] sm:$0xff] }
   0x5   :  { %194 = vmatprep.subr.bf16.mxu0 %v215_v0  ;;  %v187_v58 = vld [vmem:[%s307_s4] ss:$0 sm:$0xff] }
   0x6   :  { %v188_v60 = vld [vmem:[%s308_s5] ss:$0 sm:$0xff] }
   0x8   :  { %195 = vmatpush3.bf16.msra.mxu0 %v41_v6  ;;  %v31_v10 = vld [vmem:[#allocation2] sm:$0xff] }
   0x9   :  { %v32_v12 = vld [vmem:[#allocation2 + $0x8] sm:$0xff] }
   0xb   :  { %197 = vmatmul.mubr.msk.bf16.vlgmr.msra.gmra.mrb[0].mxu0 %vm42_vm2, %v35_v9 }
  0xde   :  { %v80_v11 = vpop.f32.mrb[0].mxu0 }
  0xdf   :  { %v87_v13 = vadd.f32 %v80_v11, %v31_v10  ;;  %v198_v14 = vpop.f32.mrb[1].mxu0 }
  0xe0   :  { %v83_v15 = vpop.f32.mrb[2].mxu0 }
  0xe1   :  { %90 = vst.msk [vmem:[#allocation2] sm:$0xff] %vm28_vm0, %v87_v13  ;;  %v88_v16 = vadd.f32 %v83_v15, %v32_v12  ;;  %v199_v17 = vpop.f32.mrb[3].mxu0 }
  0xe3   :  { %91 = vst.msk [vmem:[#allocation2 + $0x8] sm:$0xff] %vm28_vm0, %v88_v16 }
  0xe8   :  { %v95_v19 = vld [vmem:[#allocation2] sm:$0xff] }
  0xe9   :  { %v104_v20 = vadd.f32 %v184_v18, %v95_v19 }
  0xea   :  { %v96_v21 = vld [vmem:[#allocation2 + $0x8] sm:$0xff] }
  0xeb   :  { %v185_v22 = vmul.f32 -1.442695, %v104_v20  ;;  %v105_v23 = vadd.f32 %v184_v18, %v96_v21 }
  0xed   :  { %203 = vpow2.f32 %v185_v22  ;;  %v186_v24 = vmul.f32 -1.442695, %v105_v23 }
  0xef   :  { %205 = vpow2.f32 %v186_v24 }
  0xf7   :  { %v204_v25 = vpop.eup %203 }
  0xf8   :  { %v112_v26 = vadd.f32 1.0, %v204_v25 }
  0xf9   :  { %v206_v27 = vpop.eup %205 }
  0xfa   :  { %207 = vrcp.f32 %v112_v26  ;;  %v113_v28 = vadd.f32 1.0, %v206_v27 }
  0xfc   :  { %209 = vrcp.f32 %v113_v28 }
 0x104   :  { %v208_v29 = vpop.eup %207 }
 0x105   :  { %120 = vrot.lane.b32.xlu0 %v208_v29, %s217_s9 }
 0x106   :  { %v210_v30 = vpop.eup %209 }
 0x109   :  { %122 = vrot.lane.b32.xlu0 %v210_v30, %s217_s9 }
 0x177   :  { %v121_v31 = vpop.permute.xlu0 %120 }
 0x178   :  { %v126_v33 = vmul.f32 %v121_v31, %v104_v20 }
 0x17a   :  { %v130_v34 = vadd.f32 %v128_v32, %v126_v33 }
 0x17b   :  { %v123_v35 = vpop.permute.xlu0 %122 }
 0x17c   :  { %v127_v37 = vmul.f32 %v123_v35, %v105_v23  ;;  %v132_v38 = vsel %vm42_vm2, %v130_v34, 0.0 }
 0x17d   :  { %133 = vadd.xlane.f32.xlu1 %v132_v38 }
 0x17e   :  { %v131_v39 = vadd.f32 %v129_v36, %v127_v37 }
 0x180   :  { %v135_v40 = vsel %vm42_vm2, %v131_v39, 0.0 }
 0x181   :  { %136 = vadd.xlane.f32.xlu1 %v135_v40 }
 0x20a   :  { %v134_v41 = vpop.xlane.xlu1 %133 }
 0x20b   :  { %v139_v42 = vmul.f32 0.03125, %v134_v41 }
 0x20d   :  { %v141_v43 = vsub.f32 %v130_v34, %v139_v42 }
 0x20e   :  { %v137_v44 = vpop.xlane.xlu1 %136 }
 0x20f   :  { %v140_v45 = vmul.f32 0.03125, %v137_v44  ;;  %v143_v46 = vmul.f32 %v141_v43, %v141_v43 }
 0x211   :  { %v142_v47 = vsub.f32 %v131_v39, %v140_v45  ;;  %v145_v48 = vsel %vm42_vm2, %v143_v46, 0.0 }
 0x212   :  { %146 = vadd.xlane.f32.xlu0 %v145_v48 }
 0x213   :  { %v144_v49 = vmul.f32 %v142_v47, %v142_v47 }
 0x215   :  { %v148_v50 = vsel %vm42_vm2, %v144_v49, 0.0 }
 0x216   :  { %149 = vadd.xlane.f32.xlu1 %v148_v50 }
 0x29f   :  { %v147_v51 = vpop.xlane.xlu0 %146 }
 0x2a0   :  { %v151_v52 = vmul.f32 0.03125, %v147_v51 }
 0x2a2   :  { %v153_v53 = vadd.f32 1e-05, %v151_v52 }
 0x2a3   :  { %v150_v54 = vpop.xlane.xlu1 %149 }
 0x2a4   :  { %211 = vrsqrt.f32 %v153_v53  ;;  %v152_v55 = vmul.f32 0.03125, %v150_v54 }
 0x2a6   :  { %v154_v56 = vadd.f32 1e-05, %v152_v55 }
 0x2a8   :  { %213 = vrsqrt.f32 %v154_v56 }
 0x2ae   :  { %v212_v57 = vpop.eup %211 }
 0x2af   :  { %v157_v59 = vmul.f32 %v212_v57, %v141_v43 }
 0x2b1   :  { %v166_v61 = vmul.f32 %v187_v58, %v157_v59 }
 0x2b2   :  { %v214_v62 = vpop.eup %213 }
 0x2b3   :  { %v175_v63 = vadd.f32 %v188_v60, %v166_v61  ;;  %v158_v0 = vmul.f32 %v214_v62, %v142_v47 }
 0x2b5   :  { %177 = vst.msk [vmem:[%s309_s6] sm:$0xff] %vm42_vm2, %v175_v63  ;;  %v167_v1 = vmul.f32 %v187_v58, %v158_v0 }
 0x2b7   :  { %v176_v2 = vadd.f32 %v188_v60, %v167_v1 }
 0x2b9   :  { %178 = vst.msk [vmem:[%s309_s6 + $0x8] sm:$0xff] %vm42_vm2, %v176_v2 }

// kernel: s4_model_forward.11
= control target key start
LH: loop header
LB: loop body
LE: loop exit
PB: predicated region body
PF: predicated region fallthrough
CT: control target
= control target key end

     0   :  { %v145_v3 = vmov 0.0   ;;  %vm146_vm0 = vmmov 0   ;;  %vm20_vm1 = vcmask 25600   ;;  %s201_s0 = inlined_call_operand.vmem [shape: f32[2,32], index: 0, kind: input, shape index: {}]   ;;  %s202_s1 = inlined_call_operand.vmem [shape: f32[32,4], index: 1, kind: input, shape index: {}]   ;;  %s203_s2 = inlined_call_operand.vmem [shape: f32[1,4], index: 2, kind: input, shape index: {}]   ;;  %s204_s3 = inlined_call_operand.hbm [shape: f32[2,4], index: 3, kind: output, shape index: {}]  }
   0x1   :  { %v25_v0 = vld [vmem:[%s202_s1] sm:$0xff]  ;;  %v26_v1 = vld [vmem:[%s202_s1 + $0x8] sm:$0xff]  ;;  %v27_v2 = vld [vmem:[%s202_s1 + $0x10] sm:$0xff]  ;;  %110 = vmatprep.subr.bf16.mxu0 %v145_v3  ;;  %114 = vmatprep.mubr.msk.bf16.mxu0 %vm146_vm0, %v145_v3 }
   0x2   :  { %v29_v4 = vpack.c.bf16 %v26_v1, %v25_v0  ;;  %v28_v5 = vld [vmem:[%s202_s1 + $0x18] sm:$0xff] }
   0x3   :  { %8 = vsyncpa [#allocation4], 0  ;;  %21 = vst.msk [vmem:[#allocation2] sm:$0x3] %vm20_vm1, %v145_v3  ;;  %v30_v6 = vpack.c.bf16 %v28_v5, %v27_v2  ;;  %v23_v7 = vld [vmem:[%s201_s0] sm:$0x3] }
   0x4   :  { %111 = vmatpush3.bf16.msra.mxu0 %v29_v4  ;;  %v24_v8 = vpack.c.bf16 %v23_v7, %v23_v7  ;;  %vm31_vm2 = vcmask 261120   ;;  %v106_v15 = vld [vmem:[%s203_s2] ss:$0 sm:$0xff]  ;;  %s147_s23 = smov [#allocation3]  }
   0x5   :  { %112 = vmatprep.subr.bf16.mxu0 %v145_v3  ;;  %s97_s24 = sshll.u32 %s147_s23, 4  ;;  %s98_s24 = int_to_ptr.vmem [resolvable:$true] %s97_s24 }
   0x6   :  { %s121_s0 = scalar_lea.vmem %s98_s24, 32  ;;  %p126_p1 = scmp.lt.s32.totalorder %s98_s24, %s98_s24 }
   0x7   :  { %p122_p0 = scmp.ne.s32.totalorder %s98_s24, %s121_s0  ;;  %p127_p2 = scmp.lt.s32.totalorder %s121_s0, %s121_s0 }
   0x8   :  { %113 = vmatpush3.bf16.msra.mxu0 %v30_v6 }
   0x9   :  { %p128_p3 = por %p127_p2, %p126_p1 }
   0xa   :  { %v22_v9 = vld [vmem:[#allocation2] sm:$0x3] }
   0xb   :  { %115 = vmatmul.mubr.msk.bf16.vlgmr.msra.gmra.mrb[0].mxu0 %vm31_vm2, %v24_v8  ;;  %p129_p4 = pnand %p128_p3, %p122_p0 }
  0xde   :  { %v69_v10 = vpop.f32.mrb[0].mxu0 }
  0xdf   :  { %v75_v11 = vadd.f32 %v69_v10, %v22_v9  ;;  %v116_v12 = vpop.f32.mrb[1].mxu0 }
  0xe0   :  { %v72_v13 = vpop.f32.mrb[2].mxu0 }
  0xe1   :  { %77 = vst.msk [vmem:[#allocation2] sm:$0x3] %vm20_vm1, %v75_v11  ;;  %v117_v14 = vpop.f32.mrb[3].mxu0 }
  0xe8   :  { %v81_v16 = vld [vmem:[#allocation2] sm:$0x3] }
  0xe9   :  { %v89_v17 = vadd.f32 %v106_v15, %v81_v16 }
  0xeb   :  { %90 = vst.msk [vmem:[#allocation3] sm:$0x3] %vm20_vm1, %v89_v17 }
  0xec   :  { %132 = shalt.err (!%p129_p4)
}
  0xed   :  { %s133_s27 = scalar_lea.hbm %s204_s3, 32 }
  0xee   :  { %p134_p5 = scmp.ne.s32.totalorder %s204_s3, %s133_s27  ;;  %p137_p6 = scmp.lt.u32.totalorder %s133_s27, %s204_s3 }
  0xf0   :  { %p139_p7 = pnand %p137_p6, %p134_p5 }
  0xf2   :  { %142 = shalt.err (!%p139_p7)
}
  0xf3   :  { %100 = dma.vmem_to_hbm [thread:$0]  %s98_s24, 32, %s204_s3, [#allocation4]  }
  0xf4   :  { %143 = dma.done.wait [#allocation4], 32  }
  0xf5   :  { %144 = vsyncadd [#allocation4], 4294967264 }
  0xf6   :  { %104 = vsyncpa [#allocation4], 1 }

</bundles_post_ra>
